<compile_context>
chip_gen: v7x
topology: tpu7x:2x2x1
jax: 0.10.0
libtpu: 0.0.40
codegen_flags: <defaults>
</compile_context>

<pallas_src>
import jax
import jax.numpy as jnp
from jax.experimental import pallas as pl
from jax.experimental.pallas import tpu as pltpu


def _copy_kernel(x_ref, o_ref):
    # Pure element-wise identity: copy the current VMEM tile to the output.
    o_ref[...] = x_ref[...]


def identity_forward(outputs, data_info=None):
    """Equivalent of Identity.forward(outputs, data_info) -> outputs[0].

    Identity requires zero data movement, so the hot path is a pure alias
    (no pallas_call, no HBM read/write, no launch overhead).
    """
    del data_info  # unused, exactly as in the PyTorch module
    return outputs[0]


_LANE = 128
# Per-block byte budget. With input+output each double-buffered (4 live
# buffers), 4 MiB blocks use ~16 MiB of VMEM -- comfortably inside the scoped
# defaults on v5e/v6e and the 64 MiB physical VMEM on v7x.
_BLOCK_BYTES = 4 * 1024 * 1024


def identity_copy(x):
    """Optional Pallas path: materialize a copy of x (bitwise identity).

    Only needed when the caller requires a fresh buffer; otherwise use
    identity_forward, which is a free alias.
    """
    n = x.size
    if n == 0:
        return x

    flat = x.reshape(-1)
    itemsize = jnp.dtype(x.dtype).itemsize

    # Pick the widest lane-dense width (multiple of 128) that divides N so the
    # output store is unmasked (no vst.msk partial stores).
    width = None
    w = _LANE * 512
    while w >= _LANE:
        if n % w == 0:
            width = w
            break
        w //= 2

    if width is None:
        # N is not a multiple of 128 (small/odd tensor): single full-array
        # block copy -- full-extent blocks are always legal.
        return pl.pallas_call(
            _copy_kernel,
            out_shape=jax.ShapeDtypeStruct(x.shape, x.dtype),
        )(x)

    rows = n // width
    x2d = flat.reshape(rows, width)

    # Largest row tile (multiple of 8, or the full extent) within the budget.
    max_rows = max(1, _BLOCK_BYTES // (width * itemsize))
    if rows <= max_rows:
        tile = rows
    else:
        tile = max(8, (max_rows // 8) * 8)

    grid = (pl.cdiv(rows, tile),)

    out2d = pl.pallas_call(
        _copy_kernel,
        out_shape=jax.ShapeDtypeStruct((rows, width), x.dtype),
        grid_spec=pl.GridSpec(
            grid=grid,
            in_specs=[pl.BlockSpec((tile, width), lambda i: (i, 0))],
            out_specs=pl.BlockSpec((tile, width), lambda i: (i, 0)),
        ),
        compiler_params=pltpu.CompilerParams(
            # Parallel axis lets v7x shard the copy across its 2 TensorCores;
            # no-op on single-TC v5e/v6e.
            dimension_semantics=("parallel",),
        ),
    )(x2d)
    return out2d.reshape(x.shape)


if __name__ == "__main__":
    key = jax.random.PRNGKey(0)
    k0, k1 = jax.random.split(key)

    # `outputs` mimics a model-head output tuple: (logits/hidden, pooled)
    batch, seq, hidden = 2, 8, 32
    primary = jax.random.normal(k0, (batch, seq, hidden), dtype=jnp.float32)
    secondary = jax.random.normal(k1, (batch, hidden), dtype=jnp.float32)
    outputs = (primary, secondary)
    data_info = {"dummy": True}  # unused, matching the PyTorch signature

    # Hot path: pure alias (matches Identity.forward semantics exactly).
    y = identity_forward(outputs, data_info)
    y = jax.block_until_ready(y)
    assert y.shape == primary.shape
    assert y.dtype == primary.dtype
    assert bool(jnp.all(y == primary))

    # Optional materialized-copy path: exercise the Pallas kernel on TPU.
    y_copy = jax.block_until_ready(identity_copy(primary))
    assert y_copy.shape == primary.shape
    assert y_copy.dtype == primary.dtype
    assert bool(jnp.all(y_copy == primary))

    print("KERNEL_OK")
</pallas_src>

<mosaic_0001>
module attributes {stable_mosaic.version = 11 : i64} {
  func.func @_copy_kernel(%arg0: i32, %arg1: memref<1x512xf32, #tpu.memory_space<vmem>>, %arg2: memref<1x512xf32, #tpu.memory_space<vmem>>) attributes {dimension_semantics = [#tpu.dimension_semantics<parallel>], iteration_bounds = array<i64: 1>, scalar_prefetch = 0 : i64, scratch_operands = 0 : i64, tpu.core_type = #tpu.core_type<tc>, window_params = [{transform_indices = @transform_0, window_bounds = array<i64: 1, 512>}, {transform_indices = @transform_1, window_bounds = array<i64: 1, 512>}]} {
    %c0 = arith.constant 0 : index
    %c0_0 = arith.constant 0 : index
    %0 = vector.load %arg1[%c0, %c0_0] : memref<1x512xf32, #tpu.memory_space<vmem>>, vector<1x512xf32>
    %c0_1 = arith.constant 0 : index
    %c0_2 = arith.constant 0 : index
    %1 = vector.load %arg2[%c0_1, %c0_2] : memref<1x512xf32, #tpu.memory_space<vmem>>, vector<1x512xf32>
    tpu.vector_store %arg2[%c0_1, %c0_2], %0 {strides = array<i32>} : memref<1x512xf32, #tpu.memory_space<vmem>>, vector<1x512xf32>,
    return
  }
  func.func @transform_0(%arg0: i32) -> (i32, i32) {
    %c0_i32 = arith.constant 0 : i32
    %c0_i32_0 = arith.constant 0 : i32
    return %arg0, %c0_i32 : i32, i32
  }
  func.func @transform_1(%arg0: i32) -> (i32, i32) {
    %c0_i32 = arith.constant 0 : i32
    %c0_i32_0 = arith.constant 0 : i32
    return %arg0, %c0_i32 : i32, i32
  }
}

</mosaic_0001>

<bundles_post_ra>
// kernel: tpu_custom_call.1
= control target key start
LH: loop header
LB: loop body
LE: loop exit
PB: predicated region body
PF: predicated region fallthrough
CT: control target
= control target key end

     0   :  { %6 = vsyncpa [#allocation3], 0  ;;  %s128_s0 = inlined_call_operand.hbm [shape: f32[1,512], index: 0, kind: input, shape index: {}]   ;;  %s129_s1 = inlined_call_operand.hbm [shape: f32[1,512], index: 1, kind: output, shape index: {}]  }
   0x1   :  { %7 = vsyncpa [#allocation4], 0  ;;  %s92_s6 = smov [#allocation2]   ;;  %s44_s10 = scalar_lea.hbm %s128_s0, 64 }
   0x2   :  { %s14_s7 = sshll.u32 %s92_s6, 4  ;;  %p45_p0 = scmp.ne.s32.totalorder %s128_s0, %s44_s10  ;;  %s15_s7 = int_to_ptr.vmem [resolvable:$true] %s14_s7 }
   0x3   :  { %p48_p1 = scmp.lt.u32.totalorder %s44_s10, %s128_s0 }
   0x5   :  { %p50_p2 = pnand %p48_p1, %p45_p0 }
   0x7   :  { %53 = shalt.err (!%p50_p2)
}
   0x8   :  { %s54_s15 = scalar_lea.vmem %s15_s7, 64  ;;  %p59_p4 = scmp.lt.s32.totalorder %s15_s7, %s15_s7 }
   0x9   :  { %p55_p3 = scmp.ne.s32.totalorder %s15_s7, %s54_s15  ;;  %p60_p5 = scmp.lt.s32.totalorder %s54_s15, %s54_s15 }
   0xb   :  { %p61_p6 = por %p60_p5, %p59_p4 }
   0xd   :  { %p62_p7 = pnand %p61_p6, %p55_p3 }
   0xf   :  { %65 = shalt.err (!%p62_p7)
}
  0x10   :  { %17 = dma.hbm_to_vmem [thread:$0]  %s128_s0, 64, %s15_s7, [#allocation3]  }
  0x11   :  { %88 = dma.done.wait [#allocation3], 64  }
  0x12   :  { %89 = vsyncadd [#allocation3], 4294967232  ;;  %v22_v0 = vlaneseq  ;;  %s93_s18 = smov [#allocation5]   ;;  %v21_v1 = vld [vmem:[#allocation2] sm:$0xf] }
  0x13   :  { %s33_s19 = sshll.u32 %s93_s18, 4  ;;  %s34_s19 = int_to_ptr.vmem [resolvable:$true] %s33_s19 }
  0x14   :  { %vm24_vm0 = vcmp.lt.s32.totalorder %v22_v0, 512  ;;  %s66_s20 = scalar_lea.vmem %s34_s19, 64  ;;  %p71_p9 = scmp.lt.s32.totalorder %s34_s19, %s34_s19 }
  0x15   :  { %26 = vst.msk [vmem:[#allocation5] sm:$0xf] %vm24_vm0, %v21_v1  ;;  %p67_p8 = scmp.ne.s32.totalorder %s34_s19, %s66_s20  ;;  %p72_p10 = scmp.lt.s32.totalorder %s66_s20, %s66_s20 }
  0x17   :  { %p73_p11 = por %p72_p10, %p71_p9 }
  0x19   :  { %p74_p12 = pnand %p73_p11, %p67_p8 }
  0x1b   :  { %77 = shalt.err (!%p74_p12)
}
  0x1c   :  { %s78_s0 = scalar_lea.hbm %s129_s1, 64 }
  0x1d   :  { %p79_p13 = scmp.ne.s32.totalorder %s129_s1, %s78_s0  ;;  %p82_p0 = scmp.lt.u32.totalorder %s78_s0, %s129_s1 }
  0x1f   :  { %p84_p1 = pnand %p82_p0, %p79_p13 }
  0x21   :  { %87 = shalt.err (!%p84_p1)
}
  0x22   :  { %36 = dma.vmem_to_hbm [thread:$0]  %s34_s19, 64, %s129_s1, [#allocation4]  }
  0x23   :  { %90 = dma.done.wait [#allocation4], 64  }
  0x24   :  { %91 = vsyncadd [#allocation4], 4294967232 }
  0x25   :  { %40 = vsyncpa [#allocation3], 1 }
  0x26   :  { %41 = vsyncpa [#allocation4], 1 }

</bundles_post_ra>
